<compile_context>
chip_gen: v6e
topology: v6e:2x2x1
jax: 0.10.0
libtpu: 0.0.40
codegen_flags: <defaults>
</compile_context>

<pallas_src>
import jax
import jax.numpy as jnp
from jax.experimental import pallas as pl
from jax.experimental.pallas import tpu as pltpu


def _round_up(x, m):
    return ((x + m - 1) // m) * m


def _vmem_budget_bytes():
    """Per-generation VMEM budget: ~3/4 of physical, capped at 100 MiB."""
    cap = 64 * 1024 * 1024  # conservative fallback (v7x-sized)
    try:
        cap = int(pltpu.get_tpu_info().vmem_capacity_bytes)
    except Exception:
        pass
    return min((cap * 3) // 4, 100 * 1024 * 1024)


def _choose_tile(total, cap):
    """Pick a row tile: multiple of 8 (or the full dim), <= cap.

    Returns (tile, padded_total) with padded_total % tile == 0.  Never falls
    back to an oversized full-array block: if no divisor works, we pad.
    """
    cap = max(8, min(int(cap), total))
    if total <= cap:
        return total, total
    t = (cap // 8) * 8
    while t >= 8:
        if total % t == 0:
            return t, total
        t -= 8
    t = (cap // 8) * 8
    return t, _round_up(total, t)


# ----------------------------------------------------------------------------
# Matmul + bias kernel (conv path): bf16 operands, f32 accumulation, full K
# per block (no K grid axis, no accumulator round-trips).
# ----------------------------------------------------------------------------
def _matmul_bias_kernel(a_ref, b_ref, bias_ref, o_ref):
    o_ref[...] = (
        jnp.dot(a_ref[...], b_ref[...], preferred_element_type=jnp.float32)
        + bias_ref[...]
    ).astype(o_ref.dtype)


def _pallas_matmul_bias(a, b, bias, out_dtype=jnp.float32):
    """(M, K) @ (K, N) + bias with a VMEM-resident (or column-tiled) weight."""
    M, K = a.shape
    K2, N = b.shape
    assert K == K2
    a_bytes = a.dtype.itemsize
    b_bytes = b.dtype.itemsize
    o_bytes = jnp.dtype(out_dtype).itemsize

    budget = _vmem_budget_bytes()

    # ---- weight (column) tiling: keep the whole weight resident when it fits.
    Np = _round_up(N, 128) if N < 128 else N          # lane-dense output columns
    if 2 * K * Np * b_bytes <= (2 * budget) // 3:
        tn = Np                                       # fully resident weight
    else:
        # v7x-style fallback: column-tile the weight, keep full K per block.
        bcap = budget // 2
        tn = min(Np, max(128, ((bcap // (2 * K * b_bytes)) // 128) * 128))
        t = tn
        while t >= 128:                               # prefer a divisor of Np
            if Np % t == 0:
                tn = t
                break
            t -= 128
        Np = _round_up(Np, tn)
    gn = Np // tn

    # ---- row tiling of A: fill remaining VMEM, keep >= 2 blocks for megacore.
    rem = budget - 2 * K * tn * b_bytes
    tm_cap = max(8, rem // (2 * (K * a_bytes + tn * o_bytes)))
    tm_cap = min(tm_cap, 1024)
    if M >= 16:
        tm_cap = min(tm_cap, max(8, ((M // 2) // 8) * 8))
    tm, Mp = _choose_tile(M, tm_cap)
    gm = Mp // tm

    a_p = a if Mp == M else jnp.pad(a, ((0, Mp - M), (0, 0)))
    b_p = b if Np == N else jnp.pad(b, ((0, 0), (0, Np - N)))
    bias_p = bias.reshape(1, N).astype(jnp.float32)
    if Np != N:
        bias_p = jnp.pad(bias_p, ((0, 0), (0, Np - N)))

    if gn == 1:
        # Weight + bias DMA'd once and resident across the whole grid.
        grid = (gm,)
        in_specs = [pl.BlockSpec((tm, K), lambda i: (i, 0)),
                    pl.BlockSpec((K, tn), lambda i: (0, 0)),
                    pl.BlockSpec((1, tn), lambda i: (0, 0))]
        out_specs = pl.BlockSpec((tm, tn), lambda i: (i, 0))
        dims = ("parallel",)
    else:
        # Weight-column axis OUTER: each weight block is fetched once in total;
        # the big activation matrix is re-read gn times (gn is small).
        grid = (gn, gm)
        in_specs = [pl.BlockSpec((tm, K), lambda j, i: (i, 0)),
                    pl.BlockSpec((K, tn), lambda j, i: (0, j)),
                    pl.BlockSpec((1, tn), lambda j, i: (0, j))]
        out_specs = pl.BlockSpec((tm, tn), lambda j, i: (i, j))
        dims = ("parallel", "parallel")

    out = pl.pallas_call(
        _matmul_bias_kernel,
        out_shape=jax.ShapeDtypeStruct((Mp, Np), out_dtype),
        grid_spec=pltpu.PrefetchScalarGridSpec(
            num_scalar_prefetch=0,
            grid=grid,
            in_specs=in_specs,
            out_specs=out_specs,
        ),
        compiler_params=pltpu.CompilerParams(
            dimension_semantics=dims,
            vmem_limit_bytes=budget,
        ),
    )(a_p, b_p, bias_p)

    if (Mp, Np) != (M, N):
        out = out[:M, :N]
    return out


# ----------------------------------------------------------------------------
# Fused AvgPool2d(2, 2): one kernel, one HBM read, one HBM write.
# ----------------------------------------------------------------------------
def _avgpool_kernel(x_ref, pw_ref, o_ref):
    # (tr, G*4Wo) @ (G*4Wo, G*Wo): block-diagonal 0.25-matrix reduces each
    # 2x2 window; G row-pairs are folded per kernel row so the output is
    # lane-dense (>=128 output lanes) even for small Wo.
    o_ref[...] = jnp.dot(
        x_ref[...], pw_ref[...], preferred_element_type=jnp.float32
    ).astype(o_ref.dtype)


@jax.jit
def avgpool2x2_pallas(x):
    # x: (N, C, H, W) float32. PyTorch AvgPool2d(2,2) floors odd spatial dims.
    N, C, H, W = x.shape
    Ho, Wo = H // 2, W // 2
    if (H % 2) or (W % 2):
        x = x[:, :, : 2 * Ho, : 2 * Wo]

    R = N * C * Ho            # number of vertical row-pairs
    row_w = 4 * Wo            # one row-pair packed along lanes (2 rows x 2*Wo)

    # Lane-dense folding: pack G row-pairs per kernel row so G*Wo >= 128.
    G = 1 if Wo >= 128 else -(-128 // Wo)
    if G > 1:
        for g in range(G, min(4 * G, R) + 1):   # prefer a divisor of R (no pad)
            if R % g == 0:
                G = g
                break
    Rg = -(-R // G)

    x2 = x.reshape(R, row_w).astype(jnp.float32)     # contiguous view, no copy
    if Rg * G != R:
        x2 = jnp.pad(x2, ((0, Rg * G - R), (0, 0)))
    xg = x2.reshape(Rg, G * row_w)

    # Block-diagonal pooling matrix: each (4Wo, Wo) block averages one 2x2 window.
    p0 = 0.25 * jnp.tile(
        jnp.repeat(jnp.eye(Wo, dtype=jnp.float32), 2, axis=0), (2, 1)
    )                                                  # (4*Wo, Wo)
    pw = jnp.kron(jnp.eye(G, dtype=jnp.float32), p0)   # (G*4Wo, G*Wo), resident

    budget = _vmem_budget_bytes()
    pw_bytes = pw.size * 4
    row_bytes = 2 * 4 * (G * row_w + G * Wo)           # double-buffered in + out
    cap = max(8, min(1024, max(0, budget - pw_bytes) // max(row_bytes, 1)))
    if Rg >= 16:
        cap = min(cap, max(8, ((Rg // 2) // 8) * 8))   # >= 2 blocks for megacore
    tr, Rp = _choose_tile(Rg, cap)
    if Rp != Rg:
        xg = jnp.pad(xg, ((0, Rp - Rg), (0, 0)))

    out = pl.pallas_call(
        _avgpool_kernel,
        out_shape=jax.ShapeDtypeStruct((Rp, G * Wo), jnp.float32),
        grid_spec=pltpu.PrefetchScalarGridSpec(
            num_scalar_prefetch=0,
            grid=(Rp // tr,),
            in_specs=[
                pl.BlockSpec((tr, G * row_w), lambda i: (i, 0)),
                pl.BlockSpec((G * row_w, G * Wo), lambda i: (0, 0)),  # resident
            ],
            out_specs=pl.BlockSpec((tr, G * Wo), lambda i: (i, 0)),
        ),
        compiler_params=pltpu.CompilerParams(
            dimension_semantics=("parallel",),
            vmem_limit_bytes=budget,
        ),
    )(xg, pw)

    out = out[:Rg].reshape(Rg * G, Wo)[:R]
    return out.reshape(N, C, Ho, Wo)


# ----------------------------------------------------------------------------
# Conv2d(C, Cout, kernel=3, stride=2, padding=1) via NHWC im2col + matmul.
# ----------------------------------------------------------------------------
@jax.jit
def conv3x3_s2_pallas(x, weight, bias):
    # x: (N, C, H, W), weight: (Cout, C, 3, 3), bias: (Cout,)
    N, C, H, W = x.shape
    Cout = weight.shape[0]
    Ho = (H + 2 - 3) // 2 + 1
    Wo = (W + 2 - 3) // 2 + 1

    # NHWC layout (one transpose of the *original* input, not the 9x patches),
    # bf16 operands for the MXU; channel padding to a multiple of 16 is folded
    # into the spatial pad so no extra HBM pass and no padding of the big
    # patches matrix is ever needed.
    Cp = _round_up(C, 16)
    xh = jnp.transpose(x, (0, 2, 3, 1)).astype(jnp.bfloat16)
    xp = jnp.pad(xh, ((0, 0), (1, 1), (1, 1), (0, Cp - C)))

    # TODO(synk): fuse the stride-2 im2col tap gather into the Pallas kernel
    # (overlapping stride-2 windows are not expressible with blocked index
    # maps); kept as XLA wrapper glue feeding the resident-weight matmul.
    taps = [
        xp[:, ki:ki + 2 * Ho - 1:2, kj:kj + 2 * Wo - 1:2, :]
        for ki in range(3) for kj in range(3)
    ]                                                   # each (N, Ho, Wo, Cp)
    patches = jnp.concatenate(taps, axis=-1).reshape(N * Ho * Wo, 9 * Cp)

    w = weight
    if Cp != C:
        w = jnp.pad(w, ((0, 0), (0, Cp - C), (0, 0), (0, 0)))
    # Feature order (ki, kj, c) to match the concatenated taps.
    w_mat = jnp.transpose(w, (2, 3, 1, 0)).reshape(9 * Cp, Cout).astype(jnp.bfloat16)

    out = _pallas_matmul_bias(patches, w_mat, bias)     # (N*Ho*Wo, Cout) f32
    # NCHW output required by the module contract (single wrapper transpose).
    return out.reshape(N, Ho, Wo, Cout).transpose(0, 3, 1, 2)


# ----------------------------------------------------------------------------
# Module-equivalent wrapper
# ----------------------------------------------------------------------------
class Downsample2D:
    def __init__(self, channels, use_conv=False, out_channels=None,
                 name="conv", key=None):
        self.channels = channels
        self.out_channels = out_channels or channels
        self.use_conv = use_conv
        self.name = name
        if use_conv:
            if key is None:
                key = jax.random.PRNGKey(0)
            kw, kb = jax.random.split(key)
            fan_in = self.channels * 9
            bound = 1.0 / jnp.sqrt(fan_in)
            self.weight = jax.random.uniform(
                kw, (self.out_channels, self.channels, 3, 3),
                dtype=jnp.float32, minval=-bound, maxval=bound)
            self.bias = jax.random.uniform(
                kb, (self.out_channels,),
                dtype=jnp.float32, minval=-bound, maxval=bound)
        else:
            # AvgPool cannot change the channel count (matches diffusers).
            assert self.channels == self.out_channels, (
                "Downsample2D with use_conv=False requires out_channels == channels")

    def __call__(self, hidden_states):
        # NCHW in, NCHW out (matches the PyTorch forward exactly).
        if self.use_conv:
            return conv3x3_s2_pallas(hidden_states, self.weight, self.bias)
        return avgpool2x2_pallas(hidden_states)


# ----------------------------------------------------------------------------
# Demo / correctness check
# ----------------------------------------------------------------------------
if __name__ == "__main__":
    key = jax.random.PRNGKey(0)
    kx, kp = jax.random.split(key)
    x = jax.random.normal(kx, (2, 4, 16, 16), dtype=jnp.float32)

    # --- AvgPool path (use_conv=False, default) ---
    pool_mod = Downsample2D(channels=4, use_conv=False)
    y_pool = jax.block_until_ready(pool_mod(x))
    ref_pool = x.reshape(2, 4, 8, 2, 8, 2).mean(axis=(3, 5))
    assert y_pool.shape == (2, 4, 8, 8)
    assert jnp.allclose(y_pool, ref_pool, atol=2e-2, rtol=2e-2)

    # --- Conv path (use_conv=True); bf16 MXU operands -> widened tolerance ---
    conv_mod = Downsample2D(channels=4, use_conv=True, out_channels=6, key=kp)
    y_conv = jax.block_until_ready(conv_mod(x))
    ref_conv = jax.lax.conv_general_dilated(
        x, conv_mod.weight, window_strides=(2, 2),
        padding=[(1, 1), (1, 1)],
        dimension_numbers=("NCHW", "OIHW", "NCHW"),
    ) + conv_mod.bias.reshape(1, -1, 1, 1)
    assert y_conv.shape == (2, 6, 8, 8)
    assert jnp.allclose(y_conv, ref_conv, atol=2e-2, rtol=2e-2)

    print("KERNEL_OK")
</pallas_src>

<mosaic_0001>
module attributes {stable_mosaic.version = 11 : i64} {
  func.func @_avgpool_kernel(%arg0: i32, %arg1: memref<4x512xf32, #tpu.memory_space<vmem>>, %arg2: memref<512x128xf32, #tpu.memory_space<vmem>>, %arg3: memref<4x128xf32, #tpu.memory_space<vmem>>) attributes {dimension_semantics = [#tpu.dimension_semantics<parallel>], iteration_bounds = array<i64: 1>, scalar_prefetch = 0 : i64, scratch_operands = 0 : i64, tpu.core_type = #tpu.core_type<tc>, window_params = [{transform_indices = @transform_0, window_bounds = array<i64: 4, 512>}, {pipeline_mode = #tpu.pipeline_mode<synchronous>, transform_indices = @transform_1, window_bounds = array<i64: 512, 128>}, {transform_indices = @transform_2, window_bounds = array<i64: 4, 128>}]} {
    %c0 = arith.constant 0 : index
    %c0_0 = arith.constant 0 : index
    %0 = vector.load %arg1[%c0, %c0_0] : memref<4x512xf32, #tpu.memory_space<vmem>>, vector<4x512xf32>
    %c0_1 = arith.constant 0 : index
    %c0_2 = arith.constant 0 : index
    %1 = vector.load %arg2[%c0_1, %c0_2] : memref<512x128xf32, #tpu.memory_space<vmem>>, vector<512x128xf32>
    %cst = arith.constant dense<0.000000e+00> : vector<4x128xf32>
    %2 = tpu.matmul %0, %1, %cst {dimension_numbers = #tpu.dot_dimension_numbers<[1], [0], [0], [1], [0, 0, 1, 1], [], []>} : vector<4x512xf32>, vector<512x128xf32>, vector<4x128xf32> -> vector<4x128xf32>
    %c0_3 = arith.constant 0 : index
    %c0_4 = arith.constant 0 : index
    %3 = vector.load %arg3[%c0_3, %c0_4] : memref<4x128xf32, #tpu.memory_space<vmem>>, vector<4x128xf32>
    tpu.vector_store %arg3[%c0_3, %c0_4], %2 {strides = array<i32>} : memref<4x128xf32, #tpu.memory_space<vmem>>, vector<4x128xf32>,
    return
  }
  func.func @transform_0(%arg0: i32) -> (i32, i32) {
    %c0_i32 = arith.constant 0 : i32
    %c0_i32_0 = arith.constant 0 : i32
    return %arg0, %c0_i32 : i32, i32
  }
  func.func @transform_1(%arg0: i32) -> (i32, i32) {
    %c0_i32 = arith.constant 0 : i32
    %c0_i32_0 = arith.constant 0 : i32
    %c0_i32_1 = arith.constant 0 : i32
    return %c0_i32, %c0_i32_0 : i32, i32
  }
  func.func @transform_2(%arg0: i32) -> (i32, i32) {
    %c0_i32 = arith.constant 0 : i32
    %c0_i32_0 = arith.constant 0 : i32
    return %arg0, %c0_i32 : i32, i32
  }
}

</mosaic_0001>

<bundles_post_ra>
// kernel: avgpool2x2_pallas.1
= control target key start
LH: loop header
LB: loop body
LE: loop exit
PB: predicated region body
PF: predicated region fallthrough
CT: control target
= control target key end

     0   :  { %s516_s1 = inlined_call_operand.vmem [shape: f32[512,128], index: 1, kind: input, shape index: {}]   ;;  %s517_s0 = inlined_call_operand.vmem [shape: f32[4,512], index: 0, kind: input, shape index: {}]   ;;  %s518_s2 = inlined_call_operand.vmem [shape: f32[4,128], index: 2, kind: output, shape index: {}]  }
   0x1   :  { %v44_v0 = vld [vmem:[%s516_s1 + $0xf8] sm:$0xff]  ;;  %v43_v4 = vld [vmem:[%s516_s1 + $0xf0] sm:$0xff]  ;;  %v42_v8 = vld [vmem:[%s516_s1 + $0xe8] sm:$0xff] }
   0x2   :  { %v76_v1 = vld [vmem:[%s516_s1 + $0x1f8] sm:$0xff]  ;;  %228 = vmatprep.subr.mxu0 %v44_v0  ;;  %v75_v5 = vld [vmem:[%s516_s1 + $0x1f0] sm:$0xff]  ;;  %v74_v9 = vld [vmem:[%s516_s1 + $0x1e8] sm:$0xff] }
   0x3   :  { %v28_v2 = vld [vmem:[%s516_s1 + $0x78] sm:$0xff]  ;;  %263 = vmatprep.subr.mxu1 %v76_v1  ;;  %v27_v6 = vld [vmem:[%s516_s1 + $0x70] sm:$0xff]  ;;  %v26_v10 = vld [vmem:[%s516_s1 + $0x68] sm:$0xff] }
   0x4   :  { %v60_v3 = vld [vmem:[%s516_s1 + $0x178] sm:$0xff]  ;;  %229 = vmatpush3.msra.mxu0 %v28_v2  ;;  %v59_v7 = vld [vmem:[%s516_s1 + $0x170] sm:$0xff]  ;;  %v58_v11 = vld [vmem:[%s516_s1 + $0x168] sm:$0xff] }
   0x5   :  { %264 = vmatpush3.msra.mxu1 %v60_v3  ;;  %230 = vmatprep.subr.mxu0 %v43_v4  ;;  %v41_v12 = vld [vmem:[%s516_s1 + $0xe0] sm:$0xff]  ;;  %v40_v16 = vld [vmem:[%s516_s1 + $0xd8] sm:$0xff]  ;;  %v39_v20 = vld [vmem:[%s516_s1 + $0xd0] sm:$0xff] }
   0x6   :  { %265 = vmatprep.subr.mxu1 %v75_v5  ;;  %231 = vmatpush3.msra.mxu0 %v27_v6  ;;  %v73_v13 = vld [vmem:[%s516_s1 + $0x1e0] sm:$0xff]  ;;  %v72_v17 = vld [vmem:[%s516_s1 + $0x1d8] sm:$0xff]  ;;  %v71_v21 = vld [vmem:[%s516_s1 + $0x1d0] sm:$0xff] }
   0x7   :  { %266 = vmatpush3.msra.mxu1 %v59_v7  ;;  %232 = vmatprep.subr.mxu0 %v42_v8  ;;  %v25_v14 = vld [vmem:[%s516_s1 + $0x60] sm:$0xff]  ;;  %v24_v18 = vld [vmem:[%s516_s1 + $0x58] sm:$0xff]  ;;  %v23_v22 = vld [vmem:[%s516_s1 + $0x50] sm:$0xff] }
   0x8   :  { %267 = vmatprep.subr.mxu1 %v74_v9  ;;  %v57_v15 = vld [vmem:[%s516_s1 + $0x160] sm:$0xff]  ;;  %233 = vmatpush3.msra.mxu0 %v26_v10  ;;  %v56_v19 = vld [vmem:[%s516_s1 + $0x158] sm:$0xff]  ;;  %v55_v23 = vld [vmem:[%s516_s1 + $0x150] sm:$0xff] }
   0x9   :  { %268 = vmatpush3.msra.mxu1 %v58_v11  ;;  %234 = vmatprep.subr.mxu0 %v41_v12  ;;  %v38_v24 = vld [vmem:[%s516_s1 + $0xc8] sm:$0xff]  ;;  %v37_v28 = vld [vmem:[%s516_s1 + $0xc0] sm:$0xff]  ;;  %v36_v32 = vld [vmem:[%s516_s1 + $0xb8] sm:$0xff] }
   0xa   :  { %269 = vmatprep.subr.mxu1 %v73_v13  ;;  %235 = vmatpush3.msra.mxu0 %v25_v14  ;;  %v70_v25 = vld [vmem:[%s516_s1 + $0x1c8] sm:$0xff]  ;;  %v69_v29 = vld [vmem:[%s516_s1 + $0x1c0] sm:$0xff]  ;;  %v68_v33 = vld [vmem:[%s516_s1 + $0x1b8] sm:$0xff] }
   0xb   :  { %270 = vmatpush3.msra.mxu1 %v57_v15  ;;  %236 = vmatprep.subr.mxu0 %v40_v16  ;;  %v22_v26 = vld [vmem:[%s516_s1 + $0x48] sm:$0xff]  ;;  %v21_v30 = vld [vmem:[%s516_s1 + $0x40] sm:$0xff]  ;;  %v20_v34 = vld [vmem:[%s516_s1 + $0x38] sm:$0xff] }
   0xc   :  { %271 = vmatprep.subr.mxu1 %v72_v17  ;;  %237 = vmatpush3.msra.mxu0 %v24_v18  ;;  %v54_v27 = vld [vmem:[%s516_s1 + $0x148] sm:$0xff]  ;;  %v53_v31 = vld [vmem:[%s516_s1 + $0x140] sm:$0xff]  ;;  %v52_v35 = vld [vmem:[%s516_s1 + $0x138] sm:$0xff] }
   0xd   :  { %272 = vmatpush3.msra.mxu1 %v56_v19  ;;  %238 = vmatprep.subr.mxu0 %v39_v20  ;;  %v35_v36 = vld [vmem:[%s516_s1 + $0xb0] sm:$0xff]  ;;  %v34_v40 = vld [vmem:[%s516_s1 + $0xa8] sm:$0xff]  ;;  %v33_v44 = vld [vmem:[%s516_s1 + $0xa0] sm:$0xff] }
   0xe   :  { %273 = vmatprep.subr.mxu1 %v71_v21  ;;  %239 = vmatpush3.msra.mxu0 %v23_v22  ;;  %v67_v37 = vld [vmem:[%s516_s1 + $0x1b0] sm:$0xff]  ;;  %v66_v41 = vld [vmem:[%s516_s1 + $0x1a8] sm:$0xff]  ;;  %v65_v45 = vld [vmem:[%s516_s1 + $0x1a0] sm:$0xff] }
   0xf   :  { %274 = vmatpush3.msra.mxu1 %v55_v23  ;;  %240 = vmatprep.subr.mxu0 %v38_v24  ;;  %v19_v38 = vld [vmem:[%s516_s1 + $0x30] sm:$0xff]  ;;  %v18_v42 = vld [vmem:[%s516_s1 + $0x28] sm:$0xff]  ;;  %v17_v46 = vld [vmem:[%s516_s1 + $0x20] sm:$0xff] }
  0x10   :  { %275 = vmatprep.subr.mxu1 %v70_v25  ;;  %241 = vmatpush3.msra.mxu0 %v22_v26  ;;  %v51_v39 = vld [vmem:[%s516_s1 + $0x130] sm:$0xff]  ;;  %v50_v43 = vld [vmem:[%s516_s1 + $0x128] sm:$0xff]  ;;  %v49_v47 = vld [vmem:[%s516_s1 + $0x120] sm:$0xff] }
  0x11   :  { %276 = vmatpush3.msra.mxu1 %v54_v27  ;;  %242 = vmatprep.subr.mxu0 %v37_v28  ;;  %v32_v48 = vld [vmem:[%s516_s1 + $0x98] sm:$0xff]  ;;  %v31_v52 = vld [vmem:[%s516_s1 + $0x90] sm:$0xff]  ;;  %v11_v56 = vld [vmem:[%s517_s0] sm:$0xff] }
  0x12   :  { %277 = vmatprep.subr.mxu1 %v69_v29  ;;  %243 = vmatpush3.msra.mxu0 %v21_v30  ;;  %v64_v49 = vld [vmem:[%s516_s1 + $0x198] sm:$0xff]  ;;  %v63_v53 = vld [vmem:[%s516_s1 + $0x190] sm:$0xff]  ;;  %v30_v57 = vld [vmem:[%s516_s1 + $0x88] sm:$0xff]  ;;  %v79_v0 = vcombine.high %v11_v56, %v11_v56 }
  0x13   :  { %278 = vmatpush3.msra.mxu1 %v53_v31  ;;  %244 = vmatprep.subr.mxu0 %v36_v32  ;;  %v16_v50 = vld [vmem:[%s516_s1 + $0x18] sm:$0xff]  ;;  %v15_v54 = vld [vmem:[%s516_s1 + $0x10] sm:$0xff]  ;;  %v62_v58 = vld [vmem:[%s516_s1 + $0x188] sm:$0xff] }
  0x14   :  { %279 = vmatprep.subr.mxu1 %v68_v33  ;;  %245 = vmatpush3.msra.mxu0 %v20_v34  ;;  %v48_v51 = vld [vmem:[%s516_s1 + $0x118] sm:$0xff]  ;;  %v47_v55 = vld [vmem:[%s516_s1 + $0x110] sm:$0xff]  ;;  %v12_v59 = vld [vmem:[%s517_s0 + $0x8] sm:$0xff] }
  0x15   :  { %280 = vmatpush3.msra.mxu1 %v52_v35  ;;  %246 = vmatprep.subr.mxu0 %v35_v36  ;;  %v14_v60 = vld [vmem:[%s516_s1 + $0x8] sm:$0xff]  ;;  %v29_v62 = vld [vmem:[%s516_s1 + $0x80] sm:$0xff]  ;;  %v80_v2 = vcombine.high %v12_v59, %v12_v59 }
  0x16   :  { %281 = vmatprep.subr.mxu1 %v67_v37  ;;  %247 = vmatpush3.msra.mxu0 %v19_v38  ;;  %v46_v61 = vld [vmem:[%s516_s1 + $0x108] sm:$0xff]  ;;  %v61_v63 = vld [vmem:[%s516_s1 + $0x180] sm:$0xff] }
  0x17   :  { %282 = vmatpush3.msra.mxu1 %v51_v39  ;;  %248 = vmatprep.subr.mxu0 %v34_v40  ;;  %v13_v1 = vld [vmem:[%s516_s1] sm:$0xff] }
  0x18   :  { %283 = vmatprep.subr.mxu1 %v66_v41  ;;  %249 = vmatpush3.msra.mxu0 %v18_v42  ;;  %v45_v3 = vld [vmem:[%s516_s1 + $0x100] sm:$0xff] }
  0x19   :  { %284 = vmatpush3.msra.mxu1 %v50_v43  ;;  %250 = vmatprep.subr.mxu0 %v33_v44 }
  0x1a   :  { %285 = vmatprep.subr.mxu1 %v65_v45  ;;  %251 = vmatpush3.msra.mxu0 %v17_v46 }
  0x1b   :  { %286 = vmatpush3.msra.mxu1 %v49_v47  ;;  %252 = vmatprep.subr.mxu0 %v32_v48 }
  0x1c   :  { %287 = vmatprep.subr.mxu1 %v64_v49  ;;  %253 = vmatpush3.msra.mxu0 %v16_v50 }
  0x1d   :  { %288 = vmatpush3.msra.mxu1 %v48_v51  ;;  %254 = vmatprep.subr.mxu0 %v31_v52 }
  0x1e   :  { %289 = vmatprep.subr.mxu1 %v63_v53  ;;  %255 = vmatpush3.msra.mxu0 %v15_v54 }
  0x1f   :  { %290 = vmatpush3.msra.mxu1 %v47_v55  ;;  %256 = vmatprep.subr.mxu0 %v30_v57 }
  0x20   :  { %291 = vmatprep.subr.mxu1 %v62_v58  ;;  %257 = vmatpush3.msra.mxu0 %v14_v60 }
  0x21   :  { %292 = vmatpush3.msra.mxu1 %v46_v61  ;;  %258 = vmatprep.subr.mxu0 %v29_v62 }
  0x22   :  { %293 = vmatprep.subr.mxu1 %v61_v63  ;;  %259 = vmatpush3.msra.mxu0 %v13_v1 }
  0x23   :  { %147 = vmatprep.mubr.f32.mxu0 %v79_v0  ;;  %294 = vmatpush3.msra.mxu1 %v45_v3 }
  0x24   :  { %217 = vmatprep.mubr.f32.mxu1 %v80_v2  ;;  %148 = vmatmul.mubr.f32.vlgmr.msra.gmra.mxu0 %v11_v56 }
  0x25   :  { %218 = vmatmul.mubr.f32.vlgmr.msra.gmra.mxu1 %v12_v59 }
  0xe4   :  { %v260_v4 = vpop.f32.mrf.mxu0 }
  0xe5   :  { %v295_v5 = vpop.f32.mrf.mxu1 }
  0xe6   :  { %v261_v6 = vpop.f32.mrf.mxu0 }
  0xe7   :  { %v296_v7 = vpop.f32.mrf.mxu1  ;;  %v262_v8 = vadd.f32 %v261_v6, %v260_v4 }
  0xe8   :  { %v297_v9 = vadd.f32 %v296_v7, %v295_v5 }
  0xea   :  { %v220_v10 = vadd.f32 %v297_v9, %v262_v8 }
  0xec   :  { %223 = vst [vmem:[%s518_s2] sm:$0xf] %v220_v10 }

</bundles_post_ra>
